<compile_context>
chip_gen: v7x
topology: tpu7x:2x2x1
jax: 0.10.0
libtpu: 0.0.40
codegen_flags: <defaults>
</compile_context>

<pallas_src>
import jax
import jax.numpy as jnp
from jax.experimental import pallas as pl
from jax.experimental.pallas import tpu as pltpu

IN_FEATURES = 4
OUT_FEATURES = 1
_BATCH_TILE = 2048  # lanes per grid step at large B (f32 tile ~32 KiB, well under VMEM)


def mynet_kernel(w_ref, b_ref, xT_ref, o_ref):
    # w_ref: SMEM (IN,)  -- weight pre-scaled by 0.25
    # b_ref: SMEM (1,)   -- bias pre-scaled by 0.25
    # xT_ref: VMEM (IN, TB) f32  (batch on lanes)
    # o_ref:  VMEM (1, TB) f32   (lane-dense output)
    x = xT_ref[...]                       # (IN, TB)
    acc = x[0:1, :] * w_ref[0]            # VPU scalar-broadcast multiply
    acc = acc + x[1:2, :] * w_ref[1]
    acc = acc + x[2:3, :] * w_ref[2]
    acc = acc + x[3:4, :] * w_ref[3]
    o_ref[...] = acc + b_ref[0]


def mynet_forward(x, weight, bias):
    """x: (B, 4) f32, weight: (1, 4) f32, bias: (1,) f32 -> (B, 1) f32.

    Computes (x @ weight.T + bias) / 4, i.e. MyNet.forward.
    """
    B = x.shape[0]

    # Fold the MyMean /4 into the (tiny) parameters once, in the wrapper.
    w_scaled = (weight.astype(jnp.float32).reshape(IN_FEATURES)) * 0.25  # (4,)
    b_scaled = (bias.astype(jnp.float32).reshape(1)) * 0.25              # (1,)

    # Transposed layout: batch on the lane axis.
    xT = x.astype(jnp.float32).T                                         # (IN, B)

    if B <= _BATCH_TILE:
        tb = B
        Bp = B
    else:
        tb = _BATCH_TILE
        Bp = pl.cdiv(B, tb) * tb
        if Bp != B:
            xT = jnp.pad(xT, ((0, 0), (0, Bp - B)))

    out_t = pl.pallas_call(
        mynet_kernel,
        out_shape=jax.ShapeDtypeStruct((1, Bp), jnp.float32),
        grid_spec=pl.GridSpec(
            grid=(Bp // tb,),
            in_specs=[
                pl.BlockSpec(memory_space=pltpu.MemorySpace.SMEM),   # w (scalars)
                pl.BlockSpec(memory_space=pltpu.MemorySpace.SMEM),   # b (scalar)
                pl.BlockSpec((IN_FEATURES, tb), lambda i: (0, i)),   # x^T tile
            ],
            out_specs=pl.BlockSpec((1, tb), lambda i: (0, i)),       # lane-dense
        ),
        compiler_params=pltpu.CompilerParams(
            dimension_semantics=("parallel",)),
    )(w_scaled, b_scaled, xT)

    # Back to PyTorch layout (B, OUT_FEATURES).
    return out_t[:, :B].T


if __name__ == "__main__":
    key = jax.random.PRNGKey(0)
    B = 8
    x = jax.random.normal(key, (B, IN_FEATURES), dtype=jnp.float32)

    # Deterministic init mirroring MyNet.weight_init(): weight=8.0, bias=2.0
    weight = jnp.full((OUT_FEATURES, IN_FEATURES), 8.0, dtype=jnp.float32)
    bias = jnp.full((OUT_FEATURES,), 2.0, dtype=jnp.float32)

    out = mynet_forward(x, weight, bias)
    out = jax.block_until_ready(out)

    # Reference check in plain JAX
    ref = (x @ weight.T + bias) / 4.0
    assert out.shape == (B, OUT_FEATURES)
    assert jnp.allclose(out, ref, atol=1e-5, rtol=1e-5)

    # TODO(synk): my_hook / backward gradient hooks have no Pallas equivalent
    # (forward-only kernel).
    print("KERNEL_OK")
</pallas_src>

<mosaic_0001>
module attributes {stable_mosaic.version = 11 : i64} {
  func.func @mynet_kernel(%arg0: i32, %arg1: memref<4xf32, #tpu.memory_space<smem>>, %arg2: memref<1xf32, #tpu.memory_space<smem>>, %arg3: memref<4x8xf32, #tpu.memory_space<vmem>>, %arg4: memref<1x8xf32, #tpu.memory_space<vmem>>) attributes {dimension_semantics = [#tpu.dimension_semantics<parallel>], iteration_bounds = array<i64: 1>, scalar_prefetch = 0 : i64, scratch_operands = 0 : i64, tpu.core_type = #tpu.core_type<tc>, window_params = [{transform_indices = @transform_0, window_bounds = array<i64: 4>}, {transform_indices = @transform_1, window_bounds = array<i64: 1>}, {transform_indices = @transform_2, window_bounds = array<i64: 4, 8>}, {transform_indices = @transform_3, window_bounds = array<i64: 1, 8>}]} {
    %c0 = arith.constant 0 : index
    %c0_0 = arith.constant 0 : index
    %0 = vector.load %arg3[%c0, %c0_0] : memref<4x8xf32, #tpu.memory_space<vmem>>, vector<4x8xf32>
    %1 = vector.extract_strided_slice %0 {offsets = [0, 0], sizes = [1, 8], strides = [1, 1]} : vector<4x8xf32> to vector<1x8xf32>
    %c0_1 = arith.constant 0 : index
    %2 = memref.load %arg1[%c0_1] : memref<4xf32, #tpu.memory_space<smem>>
    %3 = vector.broadcast %2 : f32 to vector<1x8xf32>
    %4 = arith.mulf %1, %3 : vector<1x8xf32>
    %5 = vector.extract_strided_slice %0 {offsets = [1, 0], sizes = [1, 8], strides = [1, 1]} : vector<4x8xf32> to vector<1x8xf32>
    %c1 = arith.constant 1 : index
    %6 = memref.load %arg1[%c1] : memref<4xf32, #tpu.memory_space<smem>>
    %7 = vector.broadcast %6 : f32 to vector<1x8xf32>
    %8 = arith.mulf %5, %7 : vector<1x8xf32>
    %9 = arith.addf %4, %8 : vector<1x8xf32>
    %10 = vector.extract_strided_slice %0 {offsets = [2, 0], sizes = [1, 8], strides = [1, 1]} : vector<4x8xf32> to vector<1x8xf32>
    %c2 = arith.constant 2 : index
    %11 = memref.load %arg1[%c2] : memref<4xf32, #tpu.memory_space<smem>>
    %12 = vector.broadcast %11 : f32 to vector<1x8xf32>
    %13 = arith.mulf %10, %12 : vector<1x8xf32>
    %14 = arith.addf %9, %13 : vector<1x8xf32>
    %15 = vector.extract_strided_slice %0 {offsets = [3, 0], sizes = [1, 8], strides = [1, 1]} : vector<4x8xf32> to vector<1x8xf32>
    %c3 = arith.constant 3 : index
    %16 = memref.load %arg1[%c3] : memref<4xf32, #tpu.memory_space<smem>>
    %17 = vector.broadcast %16 : f32 to vector<1x8xf32>
    %18 = arith.mulf %15, %17 : vector<1x8xf32>
    %19 = arith.addf %14, %18 : vector<1x8xf32>
    %c0_2 = arith.constant 0 : index
    %20 = memref.load %arg2[%c0_2] : memref<1xf32, #tpu.memory_space<smem>>
    %21 = vector.broadcast %20 : f32 to vector<1x8xf32>
    %22 = arith.addf %19, %21 : vector<1x8xf32>
    %c0_3 = arith.constant 0 : index
    %c0_4 = arith.constant 0 : index
    %23 = vector.load %arg4[%c0_3, %c0_4] : memref<1x8xf32, #tpu.memory_space<vmem>>, vector<1x8xf32>
    tpu.vector_store %arg4[%c0_3, %c0_4], %22 {strides = array<i32>} : memref<1x8xf32, #tpu.memory_space<vmem>>, vector<1x8xf32>,
    return
  }
  func.func @transform_0(%arg0: i32) -> i32 {
    %c0_i32 = arith.constant 0 : i32
    %c0_i32_0 = arith.constant 0 : i32
    return %c0_i32 : i32
  }
  func.func @transform_1(%arg0: i32) -> i32 {
    %c0_i32 = arith.constant 0 : i32
    %c0_i32_0 = arith.constant 0 : i32
    return %c0_i32 : i32
  }
  func.func @transform_2(%arg0: i32) -> (i32, i32) {
    %c0_i32 = arith.constant 0 : i32
    %c0_i32_0 = arith.constant 0 : i32
    return %c0_i32, %arg0 : i32, i32
  }
  func.func @transform_3(%arg0: i32) -> (i32, i32) {
    %c0_i32 = arith.constant 0 : i32
    %c0_i32_0 = arith.constant 0 : i32
    return %c0_i32, %arg0 : i32, i32
  }
}

</mosaic_0001>

<bundles_post_ra>
// kernel: tpu_custom_call.1
= control target key start
LH: loop header
LB: loop body
LE: loop exit
PB: predicated region body
PF: predicated region fallthrough
CT: control target
= control target key end

     0   :  { %9 = vsyncpa [#allocation5], 0  ;;  %s160_s0 = inlined_call_operand.vmem [shape: f32[4], index: 0, kind: input, shape index: {}]   ;;  %s161_s1 = inlined_call_operand.<no memory space> [shape: f32[1], index: 1, kind: input, shape index: {}]   ;;  %s162_s2 = inlined_call_operand.vmem [shape: f32[4,8], index: 2, kind: input, shape index: {}]   ;;  %s163_s3 = inlined_call_operand.hbm [shape: f32[1,8], index: 3, kind: output, shape index: {}]  }
   0x1   :  { %10 = vsyncpa [#allocation4], 0  ;;  %s17_s14 = sshll.u32 %s160_s0, 4  ;;  %s18_s14 = int_to_ptr.vmem [resolvable:$true] %s17_s14 }
   0x2   :  { %s79_s15 = scalar_lea.vmem %s18_s14, 16  ;;  %p84_p1 = scmp.lt.s32.totalorder %s18_s14, %s18_s14 }
   0x3   :  { %p80_p0 = scmp.ne.s32.totalorder %s18_s14, %s79_s15  ;;  %p85_p2 = scmp.lt.s32.totalorder %s79_s15, %s79_s15 }
   0x5   :  { %p86_p3 = por %p85_p2, %p84_p1 }
   0x7   :  { %p87_p4 = pnand %p86_p3, %p80_p0 }
   0x9   :  { %90 = shalt.err (!%p87_p4)
}
   0xa   :  { %s117_s16 = smov [#allocation3]  }
   0xb   :  { %20 = dma.vmem_to_smem %s18_s14, 16, %s117_s16, [#allocation5]  }
   0xc   :  { %113 = dma.done.wait [#allocation5], 16  }
   0xd   :  { %114 = vsyncadd [#allocation5], 4294967280 }
   0xe   :  { %28 = sfence }
   0xf   :  { %s30_s17 = sld [smem:[#allocation3]]  ;;  %s74_s18 = sld [smem:[#allocation3 + $0x1]]  ;;  %v29_v0 = vld [vmem:[%s162_s2] sm:$0xf]  ;;  %v55_v14 = vstv %s161_s1  ;;  %vm57_vm0 = vcmask 57344  }
  0x10   :  { %s75_s19 = sld [smem:[#allocation3 + $0x2]]  ;;  %s76_s20 = sld [smem:[#allocation3 + $0x3]] }
  0x11   :  { %s118_s24 = smov [#allocation6]  }
  0x12   :  { %s65_s25 = sshll.u32 %s118_s24, 4  ;;  %s66_s25 = int_to_ptr.vmem [resolvable:$true] %s65_s25 }
  0x13   :  { %s91_s2 = scalar_lea.vmem %s66_s25, 16  ;;  %s95_s26 = scalar_lea.vmem %s66_s25, 32 }
  0x14   :  { %p92_p5 = scmp.ne.s32.totalorder %s66_s25, %s91_s2  ;;  %p96_p6 = scmp.lt.s32.totalorder %s66_s25, %s66_s25 }
  0x15   :  { %v31_v1 = vstv %s30_s17  ;;  %v34_v2 = vstv %s74_s18  ;;  %p97_p7 = scmp.lt.s32.totalorder %s95_s26, %s91_s2 }
  0x16   :  { %v32_v3 = vmul.f32 %v31_v1, %v29_v0  ;;  %v35_v4 = vmul.f32 %v34_v2, %v29_v0  ;;  %v41_v5 = vstv %s75_s19  ;;  %v48_v6 = vstv %s76_s20 }
  0x17   :  { %v42_v7 = vmul.f32 %v41_v5, %v29_v0  ;;  %v49_v8 = vmul.f32 %v48_v6, %v29_v0  ;;  %p98_p8 = por %p97_p7, %p96_p6 }
  0x18   :  { %v37_v9 = vrot.slane %v35_v4, 1 }
  0x19   :  { %v44_v10 = vrot.slane %v42_v7, 2  ;;  %v51_v12 = vrot.slane %v49_v8, 3  ;;  %p99_p9 = pnand %p98_p8, %p92_p5 }
  0x1a   :  { %v39_v11 = vadd.f32 %v37_v9, %v32_v3 }
  0x1c   :  { %v46_v13 = vadd.f32 %v44_v10, %v39_v11 }
  0x1e   :  { %v53_v15 = vadd.f32 %v51_v12, %v46_v13 }
  0x20   :  { %v56_v16 = vadd.f32 %v55_v14, %v53_v15 }
  0x22   :  { %58 = vst.msk [vmem:[#allocation6] sm:$0x1] %vm57_vm0, %v56_v16 }
  0x23   :  { %102 = shalt.err (!%p99_p9)
}
  0x24   :  { %s103_s29 = scalar_lea.hbm %s163_s3, 16 }
  0x25   :  { %p104_p10 = scmp.ne.s32.totalorder %s163_s3, %s103_s29  ;;  %p107_p11 = scmp.lt.u32.totalorder %s103_s29, %s163_s3 }
  0x27   :  { %p109_p12 = pnand %p107_p11, %p104_p10 }
  0x29   :  { %112 = shalt.err (!%p109_p12)
}
  0x2a   :  { %68 = dma.vmem_to_hbm [thread:$0]  %s66_s25, 16, %s163_s3, [#allocation4]  }
  0x2b   :  { %115 = dma.done.wait [#allocation4], 16  }
  0x2c   :  { %116 = vsyncadd [#allocation4], 4294967280 }
  0x2d   :  { %72 = vsyncpa [#allocation4], 1 }
  0x2e   :  { %73 = vsyncpa [#allocation5], 1 }

</bundles_post_ra>
